<compile_context>
chip_gen: v7x
topology: tpu7x:2x2x1
jax: 0.10.0
libtpu: 0.0.40
codegen_flags: <defaults>
</compile_context>

<pallas_src>
import math

import jax
import jax.numpy as jnp
from jax.experimental import pallas as pl
from jax.experimental.pallas import tpu as pltpu


# =============================================================================
# Fused circular-pad + bilinear width-resize + crop (one Pallas kernel)
# =============================================================================
def _interp_matrix(width, out_w, dtype):
    """(width, out_w) matrix M such that x @ M == fused pad+bilinear+crop."""
    if out_w % width != 0:
        raise ValueError(f"out_w ({out_w}) must be a multiple of width ({width})")
    factor = out_w // width
    k = jnp.arange(out_w, dtype=jnp.float32)
    src = (k + 0.5) / factor - 0.5
    i0f = jnp.floor(src)
    w1 = src - i0f
    w0 = 1.0 - w1
    i0 = jnp.mod(i0f.astype(jnp.int32), width)
    i1 = jnp.mod(i0f.astype(jnp.int32) + 1, width)
    rows = jnp.arange(width, dtype=jnp.int32)[:, None]            # (W, 1)
    m = (w0[None, :] * (rows == i0[None, :]).astype(jnp.float32)
         + w1[None, :] * (rows == i1[None, :]).astype(jnp.float32))
    return m.astype(dtype)


def circular_bilinear_resize_ref(x, out_w):
    """Pure-XLA reference / small-tensor fallback (exact gather formula)."""
    width = int(x.shape[-1])
    if out_w % width != 0:
        raise ValueError(f"out_w ({out_w}) must be a multiple of width ({width})")
    factor = out_w // width
    k = jnp.arange(out_w, dtype=jnp.float32)
    src = (k + 0.5) / factor - 0.5
    i0f = jnp.floor(src)
    w1 = src - i0f
    w0 = 1.0 - w1
    i0 = jnp.mod(i0f.astype(jnp.int32), width)
    i1 = jnp.mod(i0f.astype(jnp.int32) + 1, width)
    a = jnp.take(x, i0, axis=-1).astype(jnp.float32)
    b = jnp.take(x, i1, axis=-1).astype(jnp.float32)
    return (w0 * a + w1 * b).astype(x.dtype)


def _fused_resize_kernel(x_ref, m_ref, o_ref):
    # One MXU matmul per row block: reads x once, writes the final columns once.
    o_ref[...] = jnp.dot(x_ref[...], m_ref[...],
                         preferred_element_type=jnp.float32).astype(o_ref.dtype)


def _round_up(n, m):
    return ((n + m - 1) // m) * m


def _vmem_capacity_bytes():
    # Generation-aware sizing: v7x has 64 MiB VMEM/TC vs 128 MiB on v5e/v6e.
    try:
        cap = int(getattr(pltpu.get_tpu_info(), "vmem_capacity_bytes", 0))
        if cap > 0:
            return cap
    except Exception:
        pass
    return 64 * 1024 * 1024          # conservative (v7x per-TC VMEM)


def circular_bilinear_resize_pallas(x, out_w, *, max_step_bytes=None):
    """Fused circular pad + bilinear width-upsample + crop, one Pallas pass.

    Design (the op is pure HBM bandwidth):
      * flatten all leading dims -> (R, W); out is (R, out_w); the bilinear
        weights live in a tiny static (W, out_w) matrix (2 nonzeros/column),
        so each row block is a single (rows, W) @ (W, out_w) matmul — still
        memory-bound for any realistic W/out_w, and no padded intermediate.
      * 1-D grid over sublane-quantized row blocks (8/16/32 rows for
        f32/bf16/int8); block size derived from VMEM capacity (v7x 64 MiB
        aware) and capped so tensors > ~2 MiB get >= ~4 grid steps, letting
        the DMA pipeline overlap prefetch(i+1)/compute(i)/writeback(i-1) and
        letting v7x megacore shard steps across both TensorCores.
      * the interpolation matrix has a constant block index -> fetched once
        and kept VMEM-resident across the grid; lane-dense out_w output.
    """
    orig_shape = x.shape
    width = int(orig_shape[-1])
    if out_w % width != 0:
        raise ValueError(f"out_w ({out_w}) must be a multiple of width ({width})")

    itemsize = jnp.dtype(x.dtype).itemsize
    rows = int(math.prod(orig_shape[:-1]))
    x2 = x.reshape(rows, width)
    m = _interp_matrix(width, out_w, x.dtype)

    vmem_cap = _vmem_capacity_bytes()
    gen_cap = (40 << 20) if vmem_cap <= (64 << 20) else (48 << 20)
    if max_step_bytes is None:
        # step <= VMEM/6 keeps 2x(in+out) + weights well inside scoped VMEM
        # even on v7x's 64 MiB; v5e/v6e cap at 16 MiB steps.
        max_step_bytes = min(16 << 20, max(4 << 20, vmem_cap // 6))

    sublane = max(8, 32 // itemsize)               # 8 f32 / 16 bf16 / 32 int8
    row_bytes = (width + out_w) * itemsize         # in-tile + out-tile bytes/row
    m_bytes = width * out_w * itemsize
    step_budget = max(sublane * row_bytes, max_step_bytes - 2 * m_bytes)
    rows_budget = max(sublane, (step_budget // row_bytes) // sublane * sublane)

    total_bytes = rows * row_bytes
    if total_bytes > (2 << 20):
        # Guarantee >= ~4 grid steps so the software pipeline actually overlaps.
        rows_budget = min(rows_budget,
                          max(sublane, _round_up(pl.cdiv(rows, 4), sublane)))

    block_rows = min(rows_budget, _round_up(rows, sublane))
    grid = (pl.cdiv(rows, block_rows),)

    step_bytes = block_rows * row_bytes
    vmem_limit = int(min(gen_cap,
                         max(16 << 20, 2 * step_bytes + 2 * m_bytes + (4 << 20))))

    out2 = pl.pallas_call(
        _fused_resize_kernel,
        out_shape=jax.ShapeDtypeStruct((rows, out_w), x.dtype),
        grid=grid,
        in_specs=[pl.BlockSpec((block_rows, width), lambda r: (r, 0)),
                  pl.BlockSpec((width, out_w), lambda r: (0, 0))],
        out_specs=pl.BlockSpec((block_rows, out_w), lambda r: (r, 0)),
        compiler_params=pltpu.CompilerParams(
            dimension_semantics=("parallel",),
            vmem_limit_bytes=vmem_limit,
        ),
    )(x2, m)
    return out2.reshape(*orig_shape[:-1], out_w)


def circular_bilinear_resize(x, out_w, *, use_pallas="auto"):
    """Dispatcher with a small-tensor fast path: for tiny W / few-KB tensors
    (this model's actual post-conv shapes) the Pallas call is pure dispatch
    overhead, so let XLA fuse the gather formula instead."""
    width = int(x.shape[-1])
    if use_pallas == "auto":
        itemsize = jnp.dtype(x.dtype).itemsize
        total_bytes = int(math.prod(x.shape[:-1])) * (width + out_w) * itemsize
        use_pallas = (width >= 128) and (total_bytes >= (1 << 20))
    if use_pallas:
        return circular_bilinear_resize_pallas(x, out_w)
    return circular_bilinear_resize_ref(x, out_w)


# =============================================================================
# SplittedMultiSlicing forward (AConv / Slicing) — dense ops stay in XLA.
# =============================================================================
def aconv_forward(x, w, b, stride=(2, 1)):
    # TODO(synk): Conv2d + ELU are dense ops left to XLA (lax.conv + jax.nn.elu);
    # only the fused pad+bilinear-resize+crop data movement is a Pallas kernel.
    ks = w.shape[-1]
    pad = ks // 2
    y = jax.lax.conv_general_dilated(
        x, w, window_strides=stride,
        padding=[(pad, pad), (pad, pad)],
        dimension_numbers=("NCHW", "OIHW", "NCHW"))
    y = y + b[None, :, None, None]
    return jax.nn.elu(y)


def slicing_forward(x, params, out_w, interpolate=True, use_pallas="auto"):
    for w, b in params:
        x = aconv_forward(x, w, b)
    if interpolate and x.shape[3] != out_w:
        assert out_w % x.shape[3] == 0
        x = circular_bilinear_resize(x, out_w, use_pallas=use_pallas)
    return x


def splitted_multi_slicing_forward(conv_list, params_list, out_w,
                                   interpolate_feats=True, reshape_fh=True,
                                   use_pallas="auto"):
    assert len(conv_list) == 4
    bs = conv_list[0].shape[0]
    feats = []
    for params, x in zip(params_list, conv_list):
        fs = out_w if interpolate_feats else x.shape[3]
        y = slicing_forward(x, params, out_w, interpolate=interpolate_feats,
                            use_pallas=use_pallas)
        feats.append(y.reshape(bs, -1, fs) if reshape_fh else y)
    return feats


def make_slicing_params(key, in_c, out_c, ks=3):
    chans = [in_c, in_c // 2, in_c // 4, out_c]
    params = []
    for i in range(3):
        key, kw, kb = jax.random.split(key, 3)
        w = 0.1 * jax.random.normal(kw, (chans[i + 1], chans[i], ks, ks), jnp.float32)
        b = 0.1 * jax.random.normal(kb, (chans[i + 1],), jnp.float32)
        params.append((w, b))
    return key, params


if __name__ == "__main__":
    key = jax.random.PRNGKey(0)

    # ---- Standalone checks of the fused Pallas resize kernel ---------------
    key, kx = jax.random.split(key)
    x = jax.random.normal(kx, (2, 4, 16, 16), dtype=jnp.float32)   # NCHW, W=16

    # bf16-representable values + power-of-two factor => the fused matmul is
    # exact irrespective of MXU f32 pass count; assert tightly.
    x_exact = x.astype(jnp.bfloat16).astype(jnp.float32)
    out = jax.block_until_ready(circular_bilinear_resize_pallas(x_exact, 64))
    assert out.shape == (2, 4, 16, 64), out.shape
    assert jnp.allclose(out, circular_bilinear_resize_ref(x_exact, 64),
                        atol=1e-6, rtol=1e-6), "fused resize exact-path mismatch"

    # General f32 values (tolerance covers reduced-precision f32 MXU passes).
    out2 = jax.block_until_ready(circular_bilinear_resize_pallas(x, 128))
    assert jnp.allclose(out2, circular_bilinear_resize_ref(x, 128),
                        atol=2e-2, rtol=2e-2), "fused resize f32 mismatch"

    # Multi-step grid with a partial trailing row block (R=84 rows, block=8).
    key, kx2 = jax.random.split(key)
    x_part = jax.random.normal(kx2, (2, 3, 14, 16), dtype=jnp.float32)
    x_part = x_part.astype(jnp.bfloat16).astype(jnp.float32)
    out3 = jax.block_until_ready(
        circular_bilinear_resize_pallas(x_part, 32, max_step_bytes=4096))
    assert jnp.allclose(out3, circular_bilinear_resize_ref(x_part, 32),
                        atol=1e-6, rtol=1e-6), "partial-block mismatch"

    # bf16 path (16-row sublane packing).
    xb = x.astype(jnp.bfloat16)
    out4 = jax.block_until_ready(circular_bilinear_resize_pallas(xb, 64))
    assert jnp.allclose(out4.astype(jnp.float32),
                        circular_bilinear_resize_ref(xb, 64).astype(jnp.float32),
                        atol=2e-2, rtol=2e-2), "bf16 mismatch"

    # Larger, production-like width: W=256 -> out_w=1024; > 2 MiB so the
    # >=4-step pipeline cap and VMEM-aware block sizing actually kick in.
    key, kx3 = jax.random.split(key)
    x_big = jax.random.normal(kx3, (4, 64, 8, 256), dtype=jnp.float32)
    x_big = x_big.astype(jnp.bfloat16).astype(jnp.float32)
    out5 = jax.block_until_ready(circular_bilinear_resize_pallas(x_big, 1024))
    assert out5.shape == (4, 64, 8, 1024), out5.shape
    assert jnp.allclose(out5, circular_bilinear_resize_ref(x_big, 1024),
                        atol=1e-6, rtol=1e-6), "large-shape mismatch"

    # ---- Full SplittedMultiSlicing forward (interpolate_feats=True) --------
    cs = (8, 16, 32, 64)
    out_scale = 8
    spatial = [(16, 16), (8, 8), (4, 4), (2, 2)]
    out_w = 16

    conv_list = []
    params_list = []
    for c, (h, w_) in zip(cs, spatial):
        key, kd = jax.random.split(key)
        conv_list.append(jax.random.normal(kd, (2, c, h, w_), dtype=jnp.float32))
        key, params = make_slicing_params(key, c, c // out_scale)
        params_list.append(params)

    # "auto" routes these tiny (W <= 16, few-KB) post-conv tensors to the XLA
    # fast path, per the perf review; the Pallas kernel is covered above.
    feats = splitted_multi_slicing_forward(conv_list, params_list, out_w,
                                           interpolate_feats=True, reshape_fh=True,
                                           use_pallas="auto")
    feats = jax.block_until_ready(feats)
    expected = [(2, 2, 16), (2, 2, 16), (2, 4, 16), (2, 8, 16)]
    for f, e in zip(feats, expected):
        assert f.shape == e, (f.shape, e)

    print("KERNEL_OK")
</pallas_src>

<mosaic_0001>
module attributes {stable_mosaic.version = 11 : i64} {
  func.func @_fused_resize_kernel(%arg0: i32, %arg1: memref<128x16xf32, #tpu.memory_space<vmem>>, %arg2: memref<16x64xf32, #tpu.memory_space<vmem>>, %arg3: memref<128x64xf32, #tpu.memory_space<vmem>>) attributes {dimension_semantics = [#tpu.dimension_semantics<parallel>], iteration_bounds = array<i64: 1>, scalar_prefetch = 0 : i64, scratch_operands = 0 : i64, tpu.core_type = #tpu.core_type<tc>, window_params = [{transform_indices = @transform_0, window_bounds = array<i64: 128, 16>}, {pipeline_mode = #tpu.pipeline_mode<synchronous>, transform_indices = @transform_1, window_bounds = array<i64: 16, 64>}, {transform_indices = @transform_2, window_bounds = array<i64: 128, 64>}]} {
    %c0 = arith.constant 0 : index
    %c0_0 = arith.constant 0 : index
    %0 = vector.load %arg1[%c0, %c0_0] : memref<128x16xf32, #tpu.memory_space<vmem>>, vector<128x16xf32>
    %c0_1 = arith.constant 0 : index
    %c0_2 = arith.constant 0 : index
    %1 = vector.load %arg2[%c0_1, %c0_2] : memref<16x64xf32, #tpu.memory_space<vmem>>, vector<16x64xf32>
    %cst = arith.constant dense<0.000000e+00> : vector<128x64xf32>
    %2 = tpu.matmul %0, %1, %cst {dimension_numbers = #tpu.dot_dimension_numbers<[1], [0], [0], [1], [0, 0, 1, 1], [], []>} : vector<128x16xf32>, vector<16x64xf32>, vector<128x64xf32> -> vector<128x64xf32>
    %c0_3 = arith.constant 0 : index
    %c0_4 = arith.constant 0 : index
    %3 = vector.load %arg3[%c0_3, %c0_4] : memref<128x64xf32, #tpu.memory_space<vmem>>, vector<128x64xf32>
    tpu.vector_store %arg3[%c0_3, %c0_4], %2 {strides = array<i32>} : memref<128x64xf32, #tpu.memory_space<vmem>>, vector<128x64xf32>,
    return
  }
  func.func @transform_0(%arg0: i32) -> (i32, i32) {
    %c0_i32 = arith.constant 0 : i32
    %c0_i32_0 = arith.constant 0 : i32
    return %arg0, %c0_i32 : i32, i32
  }
  func.func @transform_1(%arg0: i32) -> (i32, i32) {
    %c0_i32 = arith.constant 0 : i32
    %c0_i32_0 = arith.constant 0 : i32
    %c0_i32_1 = arith.constant 0 : i32
    return %c0_i32, %c0_i32_0 : i32, i32
  }
  func.func @transform_2(%arg0: i32) -> (i32, i32) {
    %c0_i32 = arith.constant 0 : i32
    %c0_i32_0 = arith.constant 0 : i32
    return %arg0, %c0_i32 : i32, i32
  }
}

</mosaic_0001>

<bundles_post_ra>
// kernel: tpu_custom_call.1
= control target key start
LH: loop header
LB: loop body
LE: loop exit
PB: predicated region body
PF: predicated region fallthrough
CT: control target
= control target key end

     0   :  { %vm29_vm0 = vcmask 130048   ;;  %vm223_vm1 = vcmask 523264   ;;  %s461_s1 = inlined_call_operand.vmem [shape: f32[16,64], index: 1, kind: input, shape index: {}]   ;;  %s462_s0 = inlined_call_operand.vmem [shape: f32[128,16], index: 0, kind: input, shape index: {}]   ;;  %s463_s2 = inlined_call_operand.vmem [shape: f32[128,64], index: 2, kind: output, shape index: {}]  }
   0x1   :  { %v27_v0 = vld [vmem:[%s461_s1] sm:$0xff]  ;;  %v28_v1 = vld [vmem:[%s461_s1 + $0x8] sm:$0xff]  ;;  %v13_v7 = vld [vmem:[%s462_s0 + $0x10] sm:$0xff] }
   0x2   :  { %v11_v2 = vld [vmem:[%s462_s0] sm:$0xff]  ;;  %v306_v3 = vpack.c.bf16 %v28_v1, %v27_v0  ;;  %v12_v5 = vld [vmem:[%s462_s0 + $0x8] sm:$0xff]  ;;  %v21_v8 = vld [vmem:[%s462_s0 + $0x50] sm:$0xff] }
   0x3   :  { %282 = vmatprep.mubr.msk.f32.mxu0 %vm29_vm0, %v11_v2  ;;  %v19_v4 = vld [vmem:[%s462_s0 + $0x40] sm:$0xff]  ;;  %v20_v6 = vld [vmem:[%s462_s0 + $0x48] sm:$0xff]  ;;  %v14_v9 = vld [vmem:[%s462_s0 + $0x18] sm:$0xff] }
   0x4   :  { %294 = vmatprep.mubr.msk.f32.mxu1 %vm29_vm0, %v19_v4  ;;  %307 = vmatprep.subr.bf16.mxu0 %v306_v3  ;;  %v22_v10 = vld [vmem:[%s462_s0 + $0x58] sm:$0xff]  ;;  %v15_v11 = vld [vmem:[%s462_s0 + $0x20] sm:$0xff]  ;;  %v16_v13 = vld [vmem:[%s462_s0 + $0x28] sm:$0xff] }
   0x5   :  { %310 = vmatprep.subr.bf16.mxu1 %v306_v3  ;;  %309 = vmatpush3.bf16.msra.mxu0 %v306_v3  ;;  %v23_v12 = vld [vmem:[%s462_s0 + $0x60] sm:$0xff]  ;;  %v24_v14 = vld [vmem:[%s462_s0 + $0x68] sm:$0xff]  ;;  %v17_v15 = vld [vmem:[%s462_s0 + $0x30] sm:$0xff] }
   0x6   :  { %311 = vmatpush3.bf16.msra.mxu1 %v306_v3  ;;  %v25_v16 = vld [vmem:[%s462_s0 + $0x70] sm:$0xff]  ;;  %v18_v17 = vld [vmem:[%s462_s0 + $0x38] sm:$0xff] }
   0x7   :  { %v26_v18 = vld [vmem:[%s462_s0 + $0x78] sm:$0xff] }
   0x8   :  { %283 = vmatmul.mubr.msk.f32.vlgmr.msra.gmra.mrb[0].mxu0 %vm29_vm0, %v12_v5 }
   0x9   :  { %295 = vmatmul.mubr.msk.f32.vlgmr.msra.gmra.mrb[0].mxu1 %vm29_vm0, %v20_v6  ;;  %285 = vmatprep.mubr.msk.f32.mxu0 %vm29_vm0, %v13_v7 }
   0xa   :  { %297 = vmatprep.mubr.msk.f32.mxu1 %vm29_vm0, %v21_v8 }
   0xc   :  { %286 = vmatmul.mubr.msk.f32.gmra.mrb[2].mxu0 %vm29_vm0, %v14_v9 }
   0xd   :  { %298 = vmatmul.mubr.msk.f32.gmra.mrb[2].mxu1 %vm29_vm0, %v22_v10  ;;  %288 = vmatprep.mubr.msk.f32.mxu0 %vm29_vm0, %v15_v11 }
   0xe   :  { %300 = vmatprep.mubr.msk.f32.mxu1 %vm29_vm0, %v23_v12 }
  0x10   :  { %289 = vmatmul.mubr.msk.f32.gmra.mrb[4].mxu0 %vm29_vm0, %v16_v13 }
  0x11   :  { %301 = vmatmul.mubr.msk.f32.gmra.mrb[4].mxu1 %vm29_vm0, %v24_v14  ;;  %291 = vmatprep.mubr.msk.f32.mxu0 %vm29_vm0, %v17_v15 }
  0x12   :  { %303 = vmatprep.mubr.msk.f32.mxu1 %vm29_vm0, %v25_v16 }
  0x14   :  { %292 = vmatmul.mubr.msk.f32.gmra.mrb[6].mxu0 %vm29_vm0, %v18_v17 }
  0x15   :  { %304 = vmatmul.mubr.msk.f32.gmra.mrb[6].mxu1 %vm29_vm0, %v26_v18 }
  0xdb   :  { %v284_v19 = vpop.f32.mrb[0].mxu0 }
  0xdc   :  { %v296_v20 = vpop.f32.mrb[0].mxu1  ;;  %225 = vst.msk [vmem:[%s463_s2 + $0x8] sm:$0xff] %vm223_vm1, %v284_v19  ;;  %v144_v21 = vpop.f32.mrb[1].mxu0 }
  0xdd   :  { %233 = vst.msk [vmem:[%s463_s2 + $0x48] sm:$0xff] %vm223_vm1, %v296_v20  ;;  %v184_v22 = vpop.f32.mrb[1].mxu1  ;;  %224 = vst.msk [vmem:[%s463_s2] sm:$0xff] %vm223_vm1, %v144_v21 }
  0xde   :  { %232 = vst.msk [vmem:[%s463_s2 + $0x40] sm:$0xff] %vm223_vm1, %v184_v22 }
  0xdf   :  { %v287_v23 = vpop.f32.mrb[2].mxu0 }
  0xe0   :  { %v299_v24 = vpop.f32.mrb[2].mxu1  ;;  %227 = vst.msk [vmem:[%s463_s2 + $0x18] sm:$0xff] %vm223_vm1, %v287_v23  ;;  %v154_v25 = vpop.f32.mrb[3].mxu0 }
  0xe1   :  { %235 = vst.msk [vmem:[%s463_s2 + $0x58] sm:$0xff] %vm223_vm1, %v299_v24  ;;  %v194_v26 = vpop.f32.mrb[3].mxu1  ;;  %226 = vst.msk [vmem:[%s463_s2 + $0x10] sm:$0xff] %vm223_vm1, %v154_v25 }
  0xe2   :  { %234 = vst.msk [vmem:[%s463_s2 + $0x50] sm:$0xff] %vm223_vm1, %v194_v26 }
  0xe3   :  { %v290_v27 = vpop.f32.mrb[4].mxu0 }
  0xe4   :  { %v302_v28 = vpop.f32.mrb[4].mxu1  ;;  %229 = vst.msk [vmem:[%s463_s2 + $0x28] sm:$0xff] %vm223_vm1, %v290_v27  ;;  %v164_v29 = vpop.f32.mrb[5].mxu0 }
  0xe5   :  { %237 = vst.msk [vmem:[%s463_s2 + $0x68] sm:$0xff] %vm223_vm1, %v302_v28  ;;  %v204_v30 = vpop.f32.mrb[5].mxu1  ;;  %228 = vst.msk [vmem:[%s463_s2 + $0x20] sm:$0xff] %vm223_vm1, %v164_v29 }
  0xe6   :  { %236 = vst.msk [vmem:[%s463_s2 + $0x60] sm:$0xff] %vm223_vm1, %v204_v30 }
  0xe7   :  { %v293_v31 = vpop.f32.mrb[6].mxu0 }
  0xe8   :  { %v305_v32 = vpop.f32.mrb[6].mxu1  ;;  %231 = vst.msk [vmem:[%s463_s2 + $0x38] sm:$0xff] %vm223_vm1, %v293_v31  ;;  %v174_v33 = vpop.f32.mrb[7].mxu0 }
  0xe9   :  { %239 = vst.msk [vmem:[%s463_s2 + $0x78] sm:$0xff] %vm223_vm1, %v305_v32  ;;  %v214_v34 = vpop.f32.mrb[7].mxu1  ;;  %230 = vst.msk [vmem:[%s463_s2 + $0x30] sm:$0xff] %vm223_vm1, %v174_v33 }
  0xea   :  { %238 = vst.msk [vmem:[%s463_s2 + $0x70] sm:$0xff] %vm223_vm1, %v214_v34 }

</bundles_post_ra>
